<compile_context>
chip_gen: v6e
topology: v6e:2x2x1
jax: 0.10.0
libtpu: 0.0.40
codegen_flags: <defaults>
</compile_context>

<pallas_src>
import functools

import jax
import jax.numpy as jnp
from jax import lax
from jax.experimental import pallas as pl
from jax.experimental.pallas import tpu as pltpu

_LANE = 128
_SUBLANE = 8


def _round_up(x, m):
    return (x + m - 1) // m * m


def _cdiv(a, b):
    return (a + b - 1) // b


# --------------------------------------------------------------------------- #
# Kernels
# --------------------------------------------------------------------------- #
def _gap1d_single_kernel(x_ref, o_ref, *, inv_len):
    """One L-block covers the whole length: reduce directly, accumulate in f32."""
    s = jnp.sum(x_ref[...], axis=-1, keepdims=True, dtype=jnp.float32)
    o_ref[...] = (s * inv_len).astype(o_ref.dtype)


def _gap1d_multi_kernel(x_ref, o_ref, acc_ref, *, true_len, inv_len, block_len,
                        mask_edge):
    """Multi L-tile reduction with a lane-dense (TR, 128) f32 accumulator.

    block_len is a multiple of 128 by construction. `mask_edge` is a static
    flag set when L % block_len != 0; the out-of-bounds lanes of the ragged
    last tile are undefined on read, so they are zeroed with a select (NOT a
    multiply: undefined data could be NaN/Inf).
    """
    k = pl.program_id(1)

    @pl.when(k == 0)
    def _init():
        acc_ref[...] = jnp.zeros_like(acc_ref)

    tr = acc_ref.shape[0]
    nchunks = block_len // _LANE

    if mask_edge:
        lane_ids = lax.broadcasted_iota(jnp.int32, (tr, _LANE), 1)  # hoisted
        tile_base = k * block_len

    def add_chunk(j, partial):
        start = j * _LANE
        if not isinstance(j, int):          # traced fori_loop index
            start = pl.multiple_of(start, _LANE)
        chunk = x_ref[:, pl.ds(start, _LANE)]          # native dtype, aligned vld
        if mask_edge:
            col = tile_base + start + lane_ids
            chunk = jnp.where(col < true_len, chunk, jnp.zeros_like(chunk))
        return partial + chunk.astype(jnp.float32)     # per-chunk upcast only

    init = jnp.zeros((tr, _LANE), jnp.float32)
    if nchunks <= 8:
        partial = init
        for j in range(nchunks):            # short: fully unrolled for LLO
            partial = add_chunk(j, partial)
    else:
        partial = lax.fori_loop(0, nchunks, add_chunk, init)
    acc_ref[...] += partial

    @pl.when(k == pl.num_programs(1) - 1)
    def _finalize():
        # Single cross-lane reduce + narrow store, once per row tile.
        row_sum = jnp.sum(acc_ref[...], axis=-1, keepdims=True)
        o_ref[...] = (row_sum * inv_len).astype(o_ref.dtype)


# --------------------------------------------------------------------------- #
# Wrapper
# --------------------------------------------------------------------------- #
def global_avg_pool1d(x, *, target_block_bytes=8 * 1024 * 1024,
                      row_tile=None, len_tile=None):
    """x: (N, C, L) -> (N, C, 1), mean over L (== F.avg_pool1d(x, kernel_size=L))."""
    N, C, L = x.shape
    R = N * C
    x2 = x.reshape(R, L)                    # free: NCL is contiguous
    itemsize = x.dtype.itemsize

    lpad = _round_up(L, _LANE)              # lane-padded length (VMEM footprint)
    # Cap so the parallel row axis has >= 2 tiles whenever R allows it (v7x megacore).
    half_rows = _round_up(max(_cdiv(R, 2), 1), _SUBLANE)

    # ---- length tile -------------------------------------------------------
    if len_tile is not None:
        TL = min(_round_up(len_tile, _LANE), lpad)
    elif lpad * itemsize * _SUBLANE <= target_block_bytes:
        TL = lpad                           # whole length fits with >= 8 rows
    else:
        rows_guess = max(min(256, half_rows), _SUBLANE)
        TL = max((target_block_bytes // (rows_guess * itemsize)) // _LANE * _LANE,
                 _LANE)
        TL = min(TL, lpad)
    if TL >= L:
        TL = L                              # full-dim block (legal for any L)
    grid_l = _cdiv(L, TL)

    # ---- row tile (byte target uses the lane-padded width) ------------------
    tl_pad = _round_up(TL, _LANE)
    if row_tile is not None:
        TR = _round_up(row_tile, _SUBLANE)
    else:
        TR = max((target_block_bytes // (tl_pad * itemsize)) // _SUBLANE * _SUBLANE,
                 _SUBLANE)
    TR = min(TR, half_rows)
    if TR >= R:
        TR = R                              # full-dim block (legal for any R)
    grid_r = _cdiv(R, TR)

    inv_len = 1.0 / L                       # true length -> masking never biases

    in_block_vmem = _round_up(TR, _SUBLANE) * tl_pad * itemsize
    # Double-buffered input + headroom; defaults stay at the 32 MiB scoped
    # limit that is safe on v7x (v5e/v6e can raise this if target_block_bytes
    # is bumped).
    vmem_limit = max(32 * 1024 * 1024, 2 * in_block_vmem + 4 * 1024 * 1024)

    cost = pl.CostEstimate(flops=R * L, transcendentals=0,
                           bytes_accessed=R * L * itemsize + R * itemsize)

    if grid_l == 1:
        kernel = functools.partial(_gap1d_single_kernel, inv_len=inv_len)
        scratch = []
    else:
        kernel = functools.partial(
            _gap1d_multi_kernel, true_len=L, inv_len=inv_len, block_len=TL,
            mask_edge=(L % TL != 0))
        scratch = [pltpu.VMEM((TR, _LANE), jnp.float32)]

    out = pl.pallas_call(
        kernel,
        out_shape=jax.ShapeDtypeStruct((R, 1), x.dtype),
        grid_spec=pltpu.PrefetchScalarGridSpec(
            num_scalar_prefetch=0,
            grid=(grid_r, grid_l),
            in_specs=[pl.BlockSpec((TR, TL), lambda i, k: (i, k))],
            out_specs=pl.BlockSpec((TR, 1), lambda i, k: (i, 0)),
            scratch_shapes=scratch,
        ),
        compiler_params=pltpu.CompilerParams(
            dimension_semantics=("parallel", "arbitrary"),
            vmem_limit_bytes=int(vmem_limit),
        ),
        cost_estimate=cost,
    )(x2)

    return out.reshape(N, C, 1)


# --------------------------------------------------------------------------- #
# Self-test
# --------------------------------------------------------------------------- #
if __name__ == "__main__":
    key = jax.random.PRNGKey(0)

    # Shape implied by the module's forward: (N, C, L), global pool over L.
    N, C, L = 2, 4, 16
    x = jax.random.normal(key, (N, C, L), dtype=jnp.float32)
    out = jax.block_until_ready(global_avg_pool1d(x))
    ref = jnp.mean(x, axis=-1, keepdims=True)
    assert out.shape == (N, C, 1), out.shape
    assert jnp.allclose(out, ref, atol=1e-5, rtol=1e-5), "mismatch (single-tile path)"

    # Exercise the multi-L-tile path with a ragged edge (no wrapper padding):
    # L=300 with len_tile=128 -> 3 L-tiles, last one masked in-kernel.
    N2, C2, L2 = 2, 16, 300
    x2 = jax.random.normal(jax.random.PRNGKey(1), (N2, C2, L2), dtype=jnp.float32)
    out2 = jax.block_until_ready(global_avg_pool1d(x2, row_tile=16, len_tile=128))
    ref2 = jnp.mean(x2, axis=-1, keepdims=True)
    assert out2.shape == (N2, C2, 1), out2.shape
    assert jnp.allclose(out2, ref2, atol=1e-5, rtol=1e-5), "mismatch (multi-tile path)"

    print("KERNEL_OK")
</pallas_src>

<mosaic_0001>
module attributes {stable_mosaic.version = 11 : i64} {
  func.func @_gap1d_single_kernel(%arg0: i32, %arg1: i32, %arg2: memref<8x16xf32, #tpu.memory_space<vmem>>, %arg3: memref<8x1xf32, #tpu.memory_space<vmem>>) attributes {dimension_semantics = [#tpu.dimension_semantics<parallel>, #tpu.dimension_semantics<arbitrary>], iteration_bounds = array<i64: 1, 1>, scalar_prefetch = 0 : i64, scratch_operands = 0 : i64, tpu.core_type = #tpu.core_type<tc>, window_params = [{transform_indices = @transform_0, window_bounds = array<i64: 8, 16>}, {transform_indices = @transform_1, window_bounds = array<i64: 8, 1>}]} {
    %c0 = arith.constant 0 : index
    %c0_0 = arith.constant 0 : index
    %0 = vector.load %arg2[%c0, %c0_0] : memref<8x16xf32, #tpu.memory_space<vmem>>, vector<8x16xf32>
    %cst = arith.constant dense<0.000000e+00> : vector<8xf32>
    %1 = vector.multi_reduction <add>, %0, %cst [1] : vector<8x16xf32> to vector<8xf32>
    %2 = vector.shape_cast %1 : vector<8xf32> to vector<8x1xf32>
    %cst_1 = arith.constant 6.250000e-02 : f32
    %3 = vector.broadcast %cst_1 : f32 to vector<8x1xf32>
    %4 = arith.mulf %2, %3 : vector<8x1xf32>
    %c0_2 = arith.constant 0 : index
    %c0_3 = arith.constant 0 : index
    %5 = vector.load %arg3[%c0_2, %c0_3] : memref<8x1xf32, #tpu.memory_space<vmem>>, vector<8x1xf32>
    tpu.vector_store %arg3[%c0_2, %c0_3], %4 {strides = array<i32>} : memref<8x1xf32, #tpu.memory_space<vmem>>, vector<8x1xf32>,
    return
  }
  func.func @transform_0(%arg0: i32, %arg1: i32) -> (i32, i32) {
    %c0_i32 = arith.constant 0 : i32
    return %arg0, %arg1 : i32, i32
  }
  func.func @transform_1(%arg0: i32, %arg1: i32) -> (i32, i32) {
    %c0_i32 = arith.constant 0 : i32
    %c0_i32_0 = arith.constant 0 : i32
    return %arg0, %c0_i32 : i32, i32
  }
}

</mosaic_0001>

<bundles_post_ra>
// kernel: tpu_custom_call.1
= control target key start
LH: loop header
LB: loop body
LE: loop exit
PB: predicated region body
PF: predicated region fallthrough
CT: control target
= control target key end

     0   :  { %6 = vsyncpa [#allocation3], 0  ;;  %s56_s6 = smov [#allocation2]   ;;  %s73_s0 = inlined_call_operand.hbm [shape: f32[8,16], index: 0, kind: input, shape index: {}]   ;;  %s74_s1 = inlined_call_operand.vmem [shape: f32[8,1], index: 1, kind: output, shape index: {}]  }
   0x1   :  { %s13_s7 = sshll.u32 %s56_s6, 4  ;;  %s14_s7 = int_to_ptr.vmem [resolvable:$true] %s13_s7 }
   0x2   :  { %s42_s8 = scalar_lea.vmem %s14_s7, 128  ;;  %p47_p1 = scmp.lt.s32.totalorder %s14_s7, %s14_s7 }
   0x3   :  { %p43_p0 = scmp.ne.s32.totalorder %s14_s7, %s42_s8  ;;  %p48_p2 = scmp.lt.s32.totalorder %s42_s8, %s42_s8 }
   0x5   :  { %p49_p3 = por %p48_p2, %p47_p1 }
   0x7   :  { %p50_p4 = pnand %p49_p3, %p43_p0 }
   0x9   :  { %53 = shalt.err (!%p50_p4)
}
   0xa   :  { %16 = dma.hbm_to_vmem [thread:$0]  %s73_s0, 128, %s14_s7, [#allocation3]  }
   0xb   :  { %54 = dma.done.wait [#allocation3], 128  }
   0xc   :  { %55 = vsyncadd [#allocation3], 4294967168  ;;  %vm21_vm0 = vcmask 130048   ;;  %v20_v0 = vld [vmem:[#allocation2] sm:$0xff]  ;;  %vm26_vm1 = vcmask 7168  }
   0xd   :  { %v22_v1 = vsel %vm21_vm0, %v20_v0, 0.0 }
   0xe   :  { %23 = vadd.xlane.f32.xlu0 %v22_v1 }
  0x97   :  { %v24_v2 = vpop.xlane.xlu0 %23 }
  0x98   :  { %v25_v3 = vmul.f32 0.0625, %v24_v2 }
  0x9a   :  { %27 = vst.msk [vmem:[%s74_s1] sm:$0xff] %vm26_vm1, %v25_v3 }
  0x9b   :  { %32 = vsyncpa [#allocation3], 1 }

</bundles_post_ra>
